<compile_context>
chip_gen: v5e
topology: v5e:2x2
jax: 0.10.0
libtpu: 0.0.40
codegen_flags: <defaults>
</compile_context>

<pallas_src>
import jax
import jax.numpy as jnp
from jax import lax
from jax.experimental import pallas as pl
from jax.experimental.pallas import tpu as pltpu


def _make_attn_kernel(num_heads, head_dim, masked):
    """One grid step == one batch element, all heads.

    Refs:
      q_ref, k_ref, v_ref : (1, S, H)  with H = num_heads * head_dim
      m_ref (if masked)   : (1, 1, S)  additive mask, already (1 - mask) * -10000
      o_ref               : (1, S, H)
    """

    def kernel(*refs):
        if masked:
            q_ref, k_ref, v_ref, m_ref, o_ref = refs
        else:
            q_ref, k_ref, v_ref, o_ref = refs
            m_ref = None

        q = q_ref[0]          # (S, H) — native dtype straight to the MXU
        k = k_ref[0]
        v = v_ref[0]
        add_mask = m_ref[0] if m_ref is not None else None   # (1, S)

        outs = []
        for h in range(num_heads):            # static loop, fully unrolled
            lo = h * head_dim
            hi = lo + head_dim
            qh = q[:, lo:hi]                  # (S, D)
            kh = k[:, lo:hi]
            vh = v[:, lo:hi]

            # scores (S, S): contract the head dim of both operands directly,
            # no explicit k.T / XLU transpose.
            s = lax.dot_general(
                qh, kh,
                dimension_numbers=(((1,), (1,)), ((), ())),
                preferred_element_type=jnp.float32,
            )
            if add_mask is not None:
                s = s + add_mask              # (1, S) broadcasts over queries

            # Numerically stable softmax in f32 (exact division — no approx
            # reciprocal, so it matches the XLA reference bit-closely).
            s = s - jnp.max(s, axis=-1, keepdims=True)
            e = jnp.exp(s)
            p = e / jnp.sum(e, axis=-1, keepdims=True)

            # PV matmul with probabilities cast back to the value dtype.
            outs.append(
                jnp.dot(p.astype(v.dtype), vh, preferred_element_type=jnp.float32)
            )

        # Single lane-dense (S, H) store instead of num_heads narrow stores.
        o_ref[0] = jnp.concatenate(outs, axis=-1).astype(o_ref.dtype)

    return kernel


def self_attention(q, k, v, mask=None, *, num_heads=4):
    """Pallas implementation of Self_Attention.forward.

    q, k, v: [B, S, H]; mask (optional): [B, S] with 1=keep, 0=mask.
    Returns [B, S, H].
    """
    B, S, H = q.shape
    assert H % num_heads == 0
    D = H // num_heads

    masked = mask is not None
    kernel = _make_attn_kernel(num_heads, D, masked)

    # Heads are sliced *inside* the kernel; q/k/v/out keep their [B, S, H]
    # layout, so no HBM transposes around the pallas_call.  Block (1, S, H)
    # takes the full (S, H) extents, so the (8, 128) tiling rule is satisfied
    # for any S, H.
    qkv_spec = pl.BlockSpec((1, S, H), lambda b: (b, 0, 0))

    in_specs = [qkv_spec, qkv_spec, qkv_spec]
    args = [q, k, v]
    if masked:
        add_mask = ((1.0 - mask.astype(jnp.float32)) * -10000.0).reshape(B, 1, S)
        in_specs.append(pl.BlockSpec((1, 1, S), lambda b: (b, 0, 0)))
        args.append(add_mask)

    return pl.pallas_call(
        kernel,
        out_shape=jax.ShapeDtypeStruct((B, S, H), q.dtype),
        grid_spec=pltpu.PrefetchScalarGridSpec(
            num_scalar_prefetch=0,
            grid=(B,),
            in_specs=in_specs,
            out_specs=qkv_spec,
        ),
        compiler_params=pltpu.CompilerParams(
            dimension_semantics=("parallel",),   # B >= 2 shards across v7x's 2 TCs
        ),
    )(*args)


def _reference(q, k, v, mask, num_heads):
    """Pure-JAX reference mirroring the PyTorch forward (true-f32 matmuls)."""
    B, S, H = q.shape
    D = H // num_heads

    def split_heads(x):
        return jnp.transpose(x.reshape(B, S, num_heads, D), (0, 2, 1, 3))

    qh, kh, vh = split_heads(q), split_heads(k), split_heads(v)
    scores = jnp.einsum("bhqd,bhkd->bhqk", qh, kh,
                        precision=lax.Precision.HIGHEST)
    if mask is not None:
        am = (1.0 - mask.astype(jnp.float32)) * -10000.0
        scores = scores + am[:, None, None, :]
    probs = jax.nn.softmax(scores, axis=-1)
    out = jnp.einsum("bhqk,bhkd->bhqd", probs, vh,
                     precision=lax.Precision.HIGHEST)
    return jnp.transpose(out, (0, 2, 1, 3)).reshape(B, S, H)


if __name__ == "__main__":
    B, S, H, NH = 2, 8, 32, 4

    key = jax.random.PRNGKey(0)
    kq, kk, kv = jax.random.split(key, 3)
    q = jax.random.normal(kq, (B, S, H), dtype=jnp.float32)
    k = jax.random.normal(kk, (B, S, H), dtype=jnp.float32)
    v = jax.random.normal(kv, (B, S, H), dtype=jnp.float32)

    # mask: last two key positions of batch 1 are padding
    mask = jnp.ones((B, S), dtype=jnp.float32)
    mask = mask.at[1, -2:].set(0.0)

    out = jax.block_until_ready(self_attention(q, k, v, mask, num_heads=NH))
    ref = _reference(q, k, v, mask, NH)
    assert out.shape == (B, S, H)
    assert jnp.allclose(out, ref, atol=2e-3, rtol=2e-3), "mismatch vs reference"

    # also exercise the mask=None specialization
    out_nm = jax.block_until_ready(self_attention(q, k, v, None, num_heads=NH))
    ref_nm = _reference(q, k, v, None, NH)
    assert jnp.allclose(out_nm, ref_nm, atol=2e-3, rtol=2e-3), "mismatch (no mask)"

    print("KERNEL_OK")
</pallas_src>

<mosaic_0001>
module attributes {stable_mosaic.version = 11 : i64} {
  func.func @kernel(%arg0: i32, %arg1: memref<1x8x32xf32, #tpu.memory_space<vmem>>, %arg2: memref<1x8x32xf32, #tpu.memory_space<vmem>>, %arg3: memref<1x8x32xf32, #tpu.memory_space<vmem>>, %arg4: memref<1x1x8xf32, #tpu.memory_space<vmem>>, %arg5: memref<1x8x32xf32, #tpu.memory_space<vmem>>) attributes {dimension_semantics = [#tpu.dimension_semantics<parallel>], iteration_bounds = array<i64: 2>, scalar_prefetch = 0 : i64, scratch_operands = 0 : i64, tpu.core_type = #tpu.core_type<tc>, window_params = [{transform_indices = @transform_0, window_bounds = array<i64: 1, 8, 32>}, {transform_indices = @transform_1, window_bounds = array<i64: 1, 8, 32>}, {transform_indices = @transform_2, window_bounds = array<i64: 1, 8, 32>}, {transform_indices = @transform_3, window_bounds = array<i64: 1, 1, 8>}, {transform_indices = @transform_4, window_bounds = array<i64: 1, 8, 32>}]} {
    %c0 = arith.constant 0 : index
    %c0_0 = arith.constant 0 : index
    %c0_1 = arith.constant 0 : index
    %0 = vector.load %arg1[%c0, %c0_0, %c0_1] : memref<1x8x32xf32, #tpu.memory_space<vmem>>, vector<1x8x32xf32>
    %1 = vector.shape_cast %0 : vector<1x8x32xf32> to vector<8x32xf32>
    %c0_2 = arith.constant 0 : index
    %c0_3 = arith.constant 0 : index
    %c0_4 = arith.constant 0 : index
    %2 = vector.load %arg2[%c0_2, %c0_3, %c0_4] : memref<1x8x32xf32, #tpu.memory_space<vmem>>, vector<1x8x32xf32>
    %3 = vector.shape_cast %2 : vector<1x8x32xf32> to vector<8x32xf32>
    %c0_5 = arith.constant 0 : index
    %c0_6 = arith.constant 0 : index
    %c0_7 = arith.constant 0 : index
    %4 = vector.load %arg3[%c0_5, %c0_6, %c0_7] : memref<1x8x32xf32, #tpu.memory_space<vmem>>, vector<1x8x32xf32>
    %5 = vector.shape_cast %4 : vector<1x8x32xf32> to vector<8x32xf32>
    %c0_8 = arith.constant 0 : index
    %c0_9 = arith.constant 0 : index
    %c0_10 = arith.constant 0 : index
    %6 = vector.load %arg4[%c0_8, %c0_9, %c0_10] : memref<1x1x8xf32, #tpu.memory_space<vmem>>, vector<1x1x8xf32>
    %7 = vector.shape_cast %6 : vector<1x1x8xf32> to vector<1x8xf32>
    %8 = vector.extract_strided_slice %1 {offsets = [0, 0], sizes = [8, 8], strides = [1, 1]} : vector<8x32xf32> to vector<8x8xf32>
    %9 = vector.extract_strided_slice %3 {offsets = [0, 0], sizes = [8, 8], strides = [1, 1]} : vector<8x32xf32> to vector<8x8xf32>
    %10 = vector.extract_strided_slice %5 {offsets = [0, 0], sizes = [8, 8], strides = [1, 1]} : vector<8x32xf32> to vector<8x8xf32>
    %cst = arith.constant dense<0.000000e+00> : vector<8x8xf32>
    %11 = tpu.matmul %8, %9, %cst {dimension_numbers = #tpu.dot_dimension_numbers<[1], [1], [0], [0], [0, 0, 1, 0], [], []>} : vector<8x8xf32>, vector<8x8xf32>, vector<8x8xf32> -> vector<8x8xf32>
    %12 = vector.broadcast %7 : vector<1x8xf32> to vector<8x8xf32>
    %13 = arith.addf %11, %12 : vector<8x8xf32>
    %cst_11 = arith.constant dense<0xFF800000> : vector<8xf32>
    %14 = vector.multi_reduction <maximumf>, %13, %cst_11 [1] : vector<8x8xf32> to vector<8xf32>
    %15 = vector.shape_cast %14 : vector<8xf32> to vector<8x1xf32>
    %16 = vector.broadcast %15 : vector<8x1xf32> to vector<8x8xf32>
    %17 = arith.subf %13, %16 : vector<8x8xf32>
    %18 = math.exp %17 : vector<8x8xf32>
    %cst_12 = arith.constant dense<0.000000e+00> : vector<8xf32>
    %19 = vector.multi_reduction <add>, %18, %cst_12 [1] : vector<8x8xf32> to vector<8xf32>
    %20 = vector.shape_cast %19 : vector<8xf32> to vector<8x1xf32>
    %21 = vector.broadcast %20 : vector<8x1xf32> to vector<8x8xf32>
    %22 = arith.divf %18, %21 : vector<8x8xf32>
    %cst_13 = arith.constant dense<0.000000e+00> : vector<8x8xf32>
    %23 = tpu.matmul %22, %10, %cst_13 {dimension_numbers = #tpu.dot_dimension_numbers<[1], [0], [0], [1], [0, 0, 1, 1], [], []>} : vector<8x8xf32>, vector<8x8xf32>, vector<8x8xf32> -> vector<8x8xf32>
    %24 = vector.extract_strided_slice %1 {offsets = [0, 8], sizes = [8, 8], strides = [1, 1]} : vector<8x32xf32> to vector<8x8xf32>
    %25 = vector.extract_strided_slice %3 {offsets = [0, 8], sizes = [8, 8], strides = [1, 1]} : vector<8x32xf32> to vector<8x8xf32>
    %26 = vector.extract_strided_slice %5 {offsets = [0, 8], sizes = [8, 8], strides = [1, 1]} : vector<8x32xf32> to vector<8x8xf32>
    %cst_14 = arith.constant dense<0.000000e+00> : vector<8x8xf32>
    %27 = tpu.matmul %24, %25, %cst_14 {dimension_numbers = #tpu.dot_dimension_numbers<[1], [1], [0], [0], [0, 0, 1, 0], [], []>} : vector<8x8xf32>, vector<8x8xf32>, vector<8x8xf32> -> vector<8x8xf32>
    %28 = vector.broadcast %7 : vector<1x8xf32> to vector<8x8xf32>
    %29 = arith.addf %27, %28 : vector<8x8xf32>
    %cst_15 = arith.constant dense<0xFF800000> : vector<8xf32>
    %30 = vector.multi_reduction <maximumf>, %29, %cst_15 [1] : vector<8x8xf32> to vector<8xf32>
    %31 = vector.shape_cast %30 : vector<8xf32> to vector<8x1xf32>
    %32 = vector.broadcast %31 : vector<8x1xf32> to vector<8x8xf32>
    %33 = arith.subf %29, %32 : vector<8x8xf32>
    %34 = math.exp %33 : vector<8x8xf32>
    %cst_16 = arith.constant dense<0.000000e+00> : vector<8xf32>
    %35 = vector.multi_reduction <add>, %34, %cst_16 [1] : vector<8x8xf32> to vector<8xf32>
    %36 = vector.shape_cast %35 : vector<8xf32> to vector<8x1xf32>
    %37 = vector.broadcast %36 : vector<8x1xf32> to vector<8x8xf32>
    %38 = arith.divf %34, %37 : vector<8x8xf32>
    %cst_17 = arith.constant dense<0.000000e+00> : vector<8x8xf32>
    %39 = tpu.matmul %38, %26, %cst_17 {dimension_numbers = #tpu.dot_dimension_numbers<[1], [0], [0], [1], [0, 0, 1, 1], [], []>} : vector<8x8xf32>, vector<8x8xf32>, vector<8x8xf32> -> vector<8x8xf32>
    %40 = vector.extract_strided_slice %1 {offsets = [0, 16], sizes = [8, 8], strides = [1, 1]} : vector<8x32xf32> to vector<8x8xf32>
    %41 = vector.extract_strided_slice %3 {offsets = [0, 16], sizes = [8, 8], strides = [1, 1]} : vector<8x32xf32> to vector<8x8xf32>
    %42 = vector.extract_strided_slice %5 {offsets = [0, 16], sizes = [8, 8], strides = [1, 1]} : vector<8x32xf32> to vector<8x8xf32>
    %cst_18 = arith.constant dense<0.000000e+00> : vector<8x8xf32>
    %43 = tpu.matmul %40, %41, %cst_18 {dimension_numbers = #tpu.dot_dimension_numbers<[1], [1], [0], [0], [0, 0, 1, 0], [], []>} : vector<8x8xf32>, vector<8x8xf32>, vector<8x8xf32> -> vector<8x8xf32>
    %44 = vector.broadcast %7 : vector<1x8xf32> to vector<8x8xf32>
    %45 = arith.addf %43, %44 : vector<8x8xf32>
    %cst_19 = arith.constant dense<0xFF800000> : vector<8xf32>
    %46 = vector.multi_reduction <maximumf>, %45, %cst_19 [1] : vector<8x8xf32> to vector<8xf32>
    %47 = vector.shape_cast %46 : vector<8xf32> to vector<8x1xf32>
    %48 = vector.broadcast %47 : vector<8x1xf32> to vector<8x8xf32>
    %49 = arith.subf %45, %48 : vector<8x8xf32>
    %50 = math.exp %49 : vector<8x8xf32>
    %cst_20 = arith.constant dense<0.000000e+00> : vector<8xf32>
    %51 = vector.multi_reduction <add>, %50, %cst_20 [1] : vector<8x8xf32> to vector<8xf32>
    %52 = vector.shape_cast %51 : vector<8xf32> to vector<8x1xf32>
    %53 = vector.broadcast %52 : vector<8x1xf32> to vector<8x8xf32>
    %54 = arith.divf %50, %53 : vector<8x8xf32>
    %cst_21 = arith.constant dense<0.000000e+00> : vector<8x8xf32>
    %55 = tpu.matmul %54, %42, %cst_21 {dimension_numbers = #tpu.dot_dimension_numbers<[1], [0], [0], [1], [0, 0, 1, 1], [], []>} : vector<8x8xf32>, vector<8x8xf32>, vector<8x8xf32> -> vector<8x8xf32>
    %56 = vector.extract_strided_slice %1 {offsets = [0, 24], sizes = [8, 8], strides = [1, 1]} : vector<8x32xf32> to vector<8x8xf32>
    %57 = vector.extract_strided_slice %3 {offsets = [0, 24], sizes = [8, 8], strides = [1, 1]} : vector<8x32xf32> to vector<8x8xf32>
    %58 = vector.extract_strided_slice %5 {offsets = [0, 24], sizes = [8, 8], strides = [1, 1]} : vector<8x32xf32> to vector<8x8xf32>
    %cst_22 = arith.constant dense<0.000000e+00> : vector<8x8xf32>
    %59 = tpu.matmul %56, %57, %cst_22 {dimension_numbers = #tpu.dot_dimension_numbers<[1], [1], [0], [0], [0, 0, 1, 0], [], []>} : vector<8x8xf32>, vector<8x8xf32>, vector<8x8xf32> -> vector<8x8xf32>
    %60 = vector.broadcast %7 : vector<1x8xf32> to vector<8x8xf32>
    %61 = arith.addf %59, %60 : vector<8x8xf32>
    %cst_23 = arith.constant dense<0xFF800000> : vector<8xf32>
    %62 = vector.multi_reduction <maximumf>, %61, %cst_23 [1] : vector<8x8xf32> to vector<8xf32>
    %63 = vector.shape_cast %62 : vector<8xf32> to vector<8x1xf32>
    %64 = vector.broadcast %63 : vector<8x1xf32> to vector<8x8xf32>
    %65 = arith.subf %61, %64 : vector<8x8xf32>
    %66 = math.exp %65 : vector<8x8xf32>
    %cst_24 = arith.constant dense<0.000000e+00> : vector<8xf32>
    %67 = vector.multi_reduction <add>, %66, %cst_24 [1] : vector<8x8xf32> to vector<8xf32>
    %68 = vector.shape_cast %67 : vector<8xf32> to vector<8x1xf32>
    %69 = vector.broadcast %68 : vector<8x1xf32> to vector<8x8xf32>
    %70 = arith.divf %66, %69 : vector<8x8xf32>
    %cst_25 = arith.constant dense<0.000000e+00> : vector<8x8xf32>
    %71 = tpu.matmul %70, %58, %cst_25 {dimension_numbers = #tpu.dot_dimension_numbers<[1], [0], [0], [1], [0, 0, 1, 1], [], []>} : vector<8x8xf32>, vector<8x8xf32>, vector<8x8xf32> -> vector<8x8xf32>
    %72 = tpu.concatenate %23, %39, %55, %71 in 1 : vector<8x8xf32>, vector<8x8xf32>, vector<8x8xf32>, vector<8x8xf32> -> vector<8x32xf32>
    %c0_26 = arith.constant 0 : index
    %c0_27 = arith.constant 0 : index
    %c0_28 = arith.constant 0 : index
    %73 = vector.load %arg5[%c0_26, %c0_27, %c0_28] : memref<1x8x32xf32, #tpu.memory_space<vmem>>, vector<1x8x32xf32>
    %74 = vector.shape_cast %73 : vector<1x8x32xf32> to vector<8x32xf32>
    %75 = vector.shape_cast %72 : vector<8x32xf32> to vector<1x8x32xf32>
    tpu.vector_store %arg5[%c0_26, %c0_27, %c0_28], %75 {strides = array<i32>} : memref<1x8x32xf32, #tpu.memory_space<vmem>>, vector<1x8x32xf32>,
    return
  }
  func.func @transform_0(%arg0: i32) -> (i32, i32, i32) {
    %c0_i32 = arith.constant 0 : i32
    %c0_i32_0 = arith.constant 0 : i32
    %c0_i32_1 = arith.constant 0 : i32
    return %arg0, %c0_i32, %c0_i32_0 : i32, i32, i32
  }
  func.func @transform_1(%arg0: i32) -> (i32, i32, i32) {
    %c0_i32 = arith.constant 0 : i32
    %c0_i32_0 = arith.constant 0 : i32
    %c0_i32_1 = arith.constant 0 : i32
    return %arg0, %c0_i32, %c0_i32_0 : i32, i32, i32
  }
  func.func @transform_2(%arg0: i32) -> (i32, i32, i32) {
    %c0_i32 = arith.constant 0 : i32
    %c0_i32_0 = arith.constant 0 : i32
    %c0_i32_1 = arith.constant 0 : i32
    return %arg0, %c0_i32, %c0_i32_0 : i32, i32, i32
  }
  func.func @transform_3(%arg0: i32) -> (i32, i32, i32) {
    %c0_i32 = arith.constant 0 : i32
    %c0_i32_0 = arith.constant 0 : i32
    %c0_i32_1 = arith.constant 0 : i32
    return %arg0, %c0_i32, %c0_i32_0 : i32, i32, i32
  }
  func.func @transform_4(%arg0: i32) -> (i32, i32, i32) {
    %c0_i32 = arith.constant 0 : i32
    %c0_i32_0 = arith.constant 0 : i32
    %c0_i32_1 = arith.constant 0 : i32
    return %arg0, %c0_i32, %c0_i32_0 : i32, i32, i32
  }
}

</mosaic_0001>

<bundles_post_ra>
// kernel: tpu_custom_call.1
= control target key start
LH: loop header
LB: loop body
LE: loop exit
PB: predicated region body
PF: predicated region fallthrough
CT: control target
= control target key end

     0   :  { %s1319_s0 = inlined_call_operand.hbm [shape: f32[2,8,32], index: 0, kind: input, shape index: {}]   ;;  %s1320_s1 = inlined_call_operand.hbm [shape: f32[2,8,32], index: 1, kind: input, shape index: {}]   ;;  %s1321_s2 = inlined_call_operand.hbm [shape: f32[2,8,32], index: 2, kind: input, shape index: {}]   ;;  %s1322_s3 = inlined_call_operand.vmem [shape: f32[2,1,8], index: 3, kind: input, shape index: {}]   ;;  %s1323_s4 = inlined_call_operand.hbm [shape: f32[2,8,32], index: 4, kind: output, shape index: {}]  }
   0x1   :  { %1325 = sst [smem:[#allocation14_spill]] %s1320_s1 }
   0x2   :  { %9 = vsyncpa [#allocation3], 0 }
   0x3   :  { %11 = vsyncpa [#allocation3 + $0x1], 0 }
   0x4   :  { %12 = vsyncpa [#allocation6], 0 }
   0x5   :  { %14 = vsyncpa [#allocation6 + $0x1], 0 }
   0x6   :  { %15 = vsyncpa [#allocation4], 0 }
   0x7   :  { %17 = vsyncpa [#allocation4 + $0x1], 0  ;;  %s1079_s15 = smov 0   ;;  %s1081_s16 = smov 0  }
   0x8   :  { %s1083_s17 = smov 0   ;;  %s1085_s18 = smov 0  }
   0x9 LB: > { %1326 = sst [smem:[#allocation12_spill]] %s1042_s17  ;;  %s1100_s19 = sadd.s32 4294967295, %s1046_s18   ;;  %s1046_s18 = sphi %s1085_s18, %s1338_s18   ;;  %s1042_s17 = sphi %s1083_s17, %s1335_s17   ;;  %s1038_s16 = sphi %s1081_s16, %s1337_s16   ;;  %s1034_s15 = sphi %s1079_s15, %s1336_s15  }
   0xa   : > { %s777_s20 = sadd.s32 4294967294, %s1046_s18   ;;  %s1104_s21 = sadd.s32 1, %s1046_s18  }
   0xb   : > { %s30_s22 = sadd.s32 1, %s1042_s17  ;;  %s27_s23 = ssub.s32 %s1046_s18, %s1104_s21 }
   0xc   : > { %p37_p0 = scmp.ne.s32.totalorder %s1042_s17, %s1038_s16  ;;  %p28_p1 = scmp.eq.s32.totalorder %s27_s23, 0 }
   0xd   : > { %p38_p2 = scmp.eq.s32.totalorder %s1046_s18, 0  ;;  %p43_p3 = scmp.ne.s32.totalorder %s1038_s16, %s1034_s15 }
   0xe   : > { %p44_p4 = scmp.eq.s32.totalorder %s1100_s19, 0  ;;  %p145_p7 = scmp.eq.s32.totalorder %s1100_s19, 1 }
   0xf   : > { %s1116_s24 = scalar_select %p28_p1, %s1042_s17, %s30_s22  }
  0x10   : > { %p39_p5 = por %p38_p2, %p37_p0  ;;  %p1118_p6 = por %p44_p4, %p43_p3 }
  0x11   : > { %1327 = sst [smem:[#allocation13_spill]] %s1116_s24  ;;  %p151_p8 = scmp.eq.s32.totalorder %s777_s20, 1 }
  0x12   : > { %p779_p9 = scmp.ge.s32.totalorder %s1046_s18, 2  ;;  %p829_p10 = scmp.lt.s32.totalorder %s1046_s18, 2 }
  0x13   : > { %p1125_p11 = por %p145_p7, %p37_p0  ;;  %p1129_p12 = por %p151_p8, %p43_p3 }
  0x14   : > { %s171_s28 = sand.u32 1, %s1042_s17   ;;  %s1135_s29 = sshll.u32 %s1046_s18, 3 }
  0x15   : > { %s1139_s30 = sshll.u32 %s171_s28, 3  ;;  %p1141_p13 = pnand %p829_p10, %p39_p5 }
  0x16   : > { %s190_s6 = sand.u32 1, %s1046_s18   ;;  %s1332_s1 = sld [smem:[#allocation14_spill]] }
  0x17   : > { %s194_s10 = scalar_lea.vmem [#allocation5], %s1139_s30  ;;  %p786_p0 = scmp.ge.s32.totalorder %s1046_s18, 1 }
  0x18   : > { %s202_s11 = sshll.u32 %s194_s10, 4  ;;  %s1152_s13 = scalar_lea.sflag [#allocation6], %s190_s6  ;;  %s203_s11 = int_to_ptr.vmem [resolvable:$true] %s202_s11 }
  0x19   : > { %p890_p2 = pneg %p1141_p13 }
  0x1c   : > { %s198_s9 = scalar_lea.hbm %s1332_s1, %s1135_s29  ;;  %s893_s7 = scalar_lea.hbm %s1332_s1, 16 }
  0x1d   : > { %s200_s12 = sshll.u32 %s198_s9, 4  ;;  %s201_s12 = int_to_ptr.hbm [resolvable:$true] %s200_s12 }
  0x1e   : > { %s886_s14 = sshra.s32 %s201_s12, 4  ;;  %s887_s14 = int_to_ptr.hbm [resolvable:$true] %s886_s14 }
  0x1f   : > { %s888_s20 = scalar_lea.hbm %s887_s14, 8  ;;  %p894_p5 = scmp.lt.s32.totalorder %s887_s14, %s1332_s1 }
  0x20   : > { %p889_p1 = scmp.ne.s32.totalorder %s887_s14, %s888_s20  ;;  %p895_p7 = scmp.lt.s32.totalorder %s893_s7, %s888_s20 }
  0x22   : > { %p891_p3 = pnand %p890_p2, %p889_p1  ;;  %p896_p8 = por %p895_p7, %p894_p5 }
  0x24   : > { %p892_p4 = pneg %p891_p3 }
  0x26   : > { %p897_p10 = pnand %p896_p8, %p892_p4 }
  0x28   : > { %900 = shalt.err (!%p897_p10)
}
  0x29   : > { %821 = dma.hbm_to_vmem [thread:$0]  (!%p1141_p13), %s201_s12, 128, %s203_s11, %s1152_s13  }
  0x2a   : > { %p232_p1 = scmp.lt.s32.totalorder %s1046_s18, 3  ;;  %s179_s22 = scalar_lea.hbm %s1319_s0, %s1135_s29 }
  0x2b   : > { %s181_s20 = sshll.u32 %s179_s22, 4  ;;  %s175_s23 = scalar_lea.vmem [#allocation2], %s1139_s30  ;;  %s182_s20 = int_to_ptr.hbm [resolvable:$true] %s181_s20 }
  0x2c   : > { %p1175_p3 = pnand %p786_p0, %p232_p1  ;;  %s183_s7 = sshll.u32 %s175_s23, 4  ;;  %s184_s7 = int_to_ptr.vmem [resolvable:$true] %s183_s7 }
  0x2d   : > { %s172_s8 = scalar_lea.sflag [#allocation3], %s171_s28  ;;  %s916_s9 = sshra.s32 %s182_s20, 4  ;;  %s917_s9 = int_to_ptr.hbm [resolvable:$true] %s916_s9 }
  0x2e   : > { %s918_s11 = scalar_lea.hbm %s917_s9, 8  ;;  %s923_s10 = scalar_lea.hbm %s1319_s0, 16 }
  0x2f   : > { %p919_p4 = scmp.ne.s32.totalorder %s917_s9, %s918_s11  ;;  %p924_p0 = scmp.lt.s32.totalorder %s917_s9, %s1319_s0 }
  0x30   : > { %p925_p8 = scmp.lt.s32.totalorder %s923_s10, %s918_s11 }
  0x31   : > { %p921_p5 = pnand %p919_p4, %p890_p2 }
  0x32   : > { %p926_p10 = por %p925_p8, %p924_p0 }
  0x33   : > { %p922_p7 = pneg %p921_p5 }
  0x35   : > { %p927_p1 = pnand %p926_p10, %p922_p7 }
  0x37   : > { %930 = shalt.err (!%p927_p1)
}
  0x38   : > { %818 = dma.hbm_to_vmem [thread:$0]  (!%p1141_p13), %s182_s20, 128, %s184_s7, %s172_s8  }
  0x39   : > { %s217_s24 = scalar_lea.hbm %s1321_s2, %s1135_s29  ;;  %s213_s12 = scalar_lea.vmem [#allocation7], %s1139_s30 }
  0x3a   : > { %s221_s6 = sshll.u32 %s213_s12, 4  ;;  %s219_s17 = sshll.u32 %s217_s24, 4  ;;  %s222_s6 = int_to_ptr.vmem [resolvable:$true] %s221_s6  ;;  %s220_s17 = int_to_ptr.hbm [resolvable:$true] %s219_s17 }
  0x3b   : > { %s946_s1 = sshra.s32 %s220_s17, 4  ;;  %s953_s20 = scalar_lea.hbm %s1321_s2, 16  ;;  %s947_s1 = int_to_ptr.hbm [resolvable:$true] %s946_s1 }
  0x3c   : > { %s948_s9 = scalar_lea.hbm %s947_s1, 8  ;;  %p954_p0 = scmp.lt.s32.totalorder %s947_s1, %s1321_s2 }
  0x3d   : > { %p949_p4 = scmp.ne.s32.totalorder %s947_s1, %s948_s9  ;;  %p955_p8 = scmp.lt.s32.totalorder %s953_s20, %s948_s9 }
  0x3f   : > { %p951_p5 = pnand %p949_p4, %p890_p2  ;;  %p956_p10 = por %p955_p8, %p954_p0 }
  0x41   : > { %p952_p7 = pneg %p951_p5 }
  0x43   : > { %p957_p1 = pnand %p956_p10, %p952_p7 }
  0x45   : > { %960 = shalt.err (!%p957_p1)
}
  0x46   : > { %824 = dma.hbm_to_vmem [thread:$0]  (!%p1141_p13), %s220_s17, 128, %s222_s6, %s1152_s13  }
  0x47   : > { %236 = sbr.rel (%p1175_p3) target bundleno = 1128 (0x468), region = 36  ;;  %s1213_s24 = sand.u32 (!%p1175_p3), 1, %s1038_s16  }
  0x48   : > { %s1216_s29 = sshll.u32 (!%p1175_p3), %s1213_s24, 3  ;;  %s239_s30 = scalar_lea.sflag (!%p1175_p3), [#allocation3], %s1213_s24 }
  0x49   : > { %s242_s22 = scalar_lea.vmem (!%p1175_p3), [#allocation2], %s1216_s29 }
  0x4c   : > { %1021 = dma.done.wait (%p1118_p6), %s239_s30, 128  }
  0x4d   : > { %1023 = vsyncadd (%p1118_p6), %s239_s30, 4294967168  ;;  %s248_s17 = sand.u32 1, %s1100_s19   ;;  %s252_s13 = scalar_lea.vmem [#allocation5], %s1216_s29 }
  0x4e   : > { %s249_s5 = scalar_lea.sflag [#allocation6], %s248_s17 }
  0x4f   : > { %1025 = dma.done.wait (%p1118_p6), %s249_s5, 256  }
  0x50   : > { %1027 = vsyncadd (%p1118_p6), %s249_s5, 4294967040  ;;  %p301_p13 = scmp.lt.s32.totalorder %s1100_s19, 1  ;;  %vm311_vm0 = vcmask 64512   ;;  %v305_v0 = vld [vmem:[%s252_s13] sm:$0xff]  ;;  %v304_v1 = vld [vmem:[%s242_s22] sm:$0xff]  ;;  %s1048_s6 = smov 120  }
  0x51   : > { %791 = vmatpush.xpose.msk.msra.mxu0 %vm311_vm0, %v305_v0  ;;  %387 = vrot.lane.b32.xlu1 %v305_v0, %s1048_s6  ;;  %s1049_s25 = smov 112   ;;  %s1050_s1 = smov 104  }
  0x52   : > { %s302_s14 = scalar_select %p301_p13, %s1100_s19, 1  ;;  %466 = vrot.lane.b32.xlu2 %v305_v0, %s1049_s25 }
  0x53   : > { %s262_s9 = scalar_lea.vmem [#allocation7], %s1216_s29  ;;  %s1051_s11 = smov 24  }
  0x54   : > { %s303_s12 = scalar_lea.vmem %s1322_s3, %s302_s14  ;;  %792 = vmatmul.msk.f32.vlgmr.msra.gmra.mxu0 %vm311_vm0, %v304_v1  ;;  %v1255_v19 = vld [vmem:[%s262_s9] sm:$0xff]  ;;  %s1052_s10 = smov 8  }
  0x55   : > { %v1244_v4 = vld [vmem:[%s303_s12] ss:$0 sm:$0xff]  ;;  %380 = vmatpush.msra.mxu1 %v1255_v19  ;;  %s1053_s20 = smov 16   ;;  %s804_s7 = sshll.u32 %s1100_s19, 3 }
  0x56   : > { %s650_s22 = scalar_lea.hbm %s1323_s4, %s804_s7  ;;  %s300_s17 = scalar_lea.vmem [#allocation8], %s1216_s29 }
  0x57   : > { %s652_s5 = sshll.u32 %s300_s17, 4  ;;  %s654_s13 = sshll.u32 %s650_s22, 4  ;;  %s653_s5 = int_to_ptr.vmem [resolvable:$true] %s652_s5  ;;  %s655_s13 = int_to_ptr.hbm [resolvable:$true] %s654_s13 }
  0x58   : > { %s640_s19 = scalar_lea.sflag [#allocation4], %s1213_s24  ;;  %s990_s14 = sshra.s32 %s655_s13, 4  ;;  %s991_s14 = int_to_ptr.hbm [resolvable:$true] %s990_s14 }
  0x59   : > { %385 = vrot.lane.b32.xlu1 %v304_v1, %s1048_s6  ;;  %s992_s28 = scalar_lea.hbm %s991_s14, 8  ;;  %s996_s12 = scalar_lea.hbm %s1323_s4, 16 }
  0x5a   : > { %544 = vrot.lane.b32.xlu2 %v305_v0, %s1050_s1  ;;  %p993_p6 = scmp.ne.s32.totalorder %s991_s14, %s992_s28  ;;  %p997_p4 = scmp.lt.s32.totalorder %s991_s14, %s1323_s4 }
  0x5b   : > { %p998_p5 = scmp.lt.s32.totalorder %s996_s12, %s992_s28 }
  0x5c   : > { %p994_p2 = pnand %p993_p6, %p1125_p11 }
  0x5d   : > { %p999_p7 = por %p998_p5, %p997_p4 }
  0x5e   : > { %p995_p3 = pneg %p994_p2 }
  0x60   : > { %p1000_p0 = pnand %p999_p7, %p995_p3 }
  0x61   : > { %542 = vrot.lane.b32.xlu1 %v304_v1, %s1050_s1 }
  0xac   : > { %v467_v8 = vpop.permute.xlu2 %466 }
  0xad   : > { %797 = vmatpush.xpose.msk.msrb.mxu1 %vm311_vm0, %v467_v8 }
  0xb4   : > { %v545_v9 = vpop.permute.xlu2 %544 }
  0xb5   : > { %800 = vmatpush.xpose.msk.msrb.mxu0 %vm311_vm0, %v545_v9 }
  0xc3   : > { %v388_v2 = vpop.permute.xlu1 %387 }
  0xc4   : > { %794 = vmatpush.xpose.msk.msra.mxu2 %vm311_vm0, %v388_v2 }
  0xcb   : > { %v386_v3 = vpop.permute.xlu1 %385 }
  0xcc   : > { %795 = vmatmul.msk.f32.vlgmr.msra.gmra.mxu2 %vm311_vm0, %v386_v3 }
  0xd1   : > { %v335_v5 = vpop.f32.mrf.mxu0 }
  0xd2   : > { %v336_v6 = vadd.f32 %v1244_v4, %v335_v5 }
  0xd3   : > { %v543_v10 = vpop.permute.xlu1 %542 }
  0xd4   : > { %v338_v7 = vsel %vm311_vm0, %v336_v6, -inf  ;;  %801 = vmatmul.msk.f32.vlgmr.msrb.gmra.mxu0 %vm311_vm0, %v543_v10 }
  0xd5   : > { %339 = vmax.xlane.f32.xlu0 %v338_v7 }
 0x148   : > { %v340_v11 = vpop.xlane.xlu0 %339 }
 0x149   : > { %v341_v12 = vsub.f32 %v336_v6, %v340_v11 }
 0x14b   : > { %v342_v13 = vmul.f32 1.442695, %v341_v12 }
 0x14d   : > { %870 = vpow2.f32 %v342_v13 }
 0x14f   : > { %v410_v14 = vpop.f32.mrf.mxu2 }
 0x150   : > { %v411_v15 = vadd.f32 %v1244_v4, %v410_v14 }
 0x151   : > { %v567_v20 = vpop.f32.mrf.mxu0 }
 0x152   : > { %v413_v16 = vsel %vm311_vm0, %v411_v15, -inf  ;;  %v568_v21 = vadd.f32 %v1244_v4, %v567_v20 }
 0x153   : > { %v871_v17 = vpop.eup %870  ;;  %414 = vmax.xlane.f32.xlu2 %v413_v16 }
 0x154   : > { %v344_v18 = vsel %vm311_vm0, %v871_v17, 0.0  ;;  %v570_v22 = vsel %vm311_vm0, %v568_v21, -inf }
 0x155   : > { %345 = vadd.xlane.f32.xlu0 %v344_v18 }
 0x169   : > { %464 = vrot.lane.b32.xlu0 %v304_v1, %s1049_s25 }
 0x193   : > { %571 = vmax.xlane.f32.xlu0 %v570_v22 }
 0x1a7   : > { %594 = vrot.lane.b32.xlu0 %v1255_v19, %s1050_s1 }
 0x1c6   : > { %v415_v23 = vpop.xlane.xlu2 %414 }
 0x1c7   : > { %v416_v24 = vsub.f32 %v411_v15, %v415_v23 }
 0x1c8   : > { %v346_v25 = vpop.xlane.xlu0 %345 }
 0x1c9   : > { %872 = vrcp.f32 %v346_v25  ;;  %v417_v26 = vmul.f32 1.442695, %v416_v24  ;;  %v358_v32 = vand.u32 2147483648, %v346_v25  ;;  %v356_v34 = vand.u32 2147483647, %v346_v25 }
 0x1ca   : > { %vm352_vm2 = vweird.f32 %v346_v25 }
 0x1cb   : > { %874 = vpow2.f32 %v417_v26  ;;  %v359_v36 = vor.u32 1.1754944e-38, %v358_v32  ;;  %vm357_vm4 = vcmp.eq.f32.partialorder %v356_v34, 8.507059e+37 }
 0x1cf   : > { %v873_v27 = vpop.eup %872 }
 0x1d0   : > { %v348_v28 = vmul.f32 %v873_v27, %v346_v25  ;;  %vm353_vm1 = vweird.f32 %v873_v27 }
 0x1d1   : > { %v1261_v29 = vpop.eup %874  ;;  %vm354_vm3 = vmor %vm352_vm2, %vm353_vm1  ;;  %vm633_vm2 = vcmask 130048  }
 0x1d2   : > { %v349_v30 = vsub.f32 1.0, %v348_v28  ;;  %v419_v31 = vsel %vm311_vm0, %v1261_v29, 0.0 }
 0x1d3   : > { %420 = vadd.xlane.f32.xlu2 %v419_v31 }
 0x1d4   : > { %v350_v33 = vmul.f32 %v873_v27, %v349_v30 }
 0x1d6   : > { %v351_v35 = vadd.f32 %v873_v27, %v350_v33 }
 0x1d8   : > { %v355_v37 = vsel %vm354_vm3, %v873_v27, %v351_v35  ;;  %vm635_vm3 = vcmask 195584  }
 0x1d9   : > { %v360_v38 = vsel %vm357_vm4, %v359_v36, %v355_v37  ;;  %vm637_vm4 = vcmask 261120  }
 0x1da   : > { %v361_v39 = vmul.f32 %v871_v17, %v360_v38 }
 0x1db   : > { %v465_v40 = vpop.permute.xlu0 %464 }
 0x1dc   : > { %793 = vmatmul.msk.f32.vlgmr.msra.gmra.mxu1 %vm311_vm0, %v361_v39 }
 0x1e4   : > { %798 = vmatmul.msk.f32.vlgmr.msrb.gmra.mxu1 %vm311_vm0, %v465_v40 }
 0x206   : > { %v572_v41 = vpop.xlane.xlu0 %571 }
 0x207   : > { %v573_v43 = vsub.f32 %v568_v21, %v572_v41 }
 0x209   : > { %v574_v44 = vmul.f32 1.442695, %v573_v43 }
 0x20b   : > { %876 = vpow2.f32 %v574_v44 }
 0x211   : > { %v877_v48 = vpop.eup %876 }
 0x212   : > { %v576_v49 = vsel %vm311_vm0, %v877_v48, 0.0 }
 0x219   : > { %v595_v50 = vpop.permute.xlu0 %594 }
 0x21a   : > { %615 = vmatpush.msrb.mxu2 %v595_v50 }
 0x259   : > { %v1269_v42 = vpop.f32.mrf.mxu1 }
 0x261   : > { %v489_v45 = vpop.f32.mrf.mxu1 }
 0x262   : > { %v490_v46 = vadd.f32 %v1244_v4, %v489_v45  ;;  %v421_v4 = vpop.xlane.xlu2 %420 }
 0x263   : > { %vm427_vm9 = vweird.f32 %v421_v4  ;;  %v433_v9 = vand.u32 2147483648, %v421_v4  ;;  %v431_v11 = vand.u32 2147483647, %v421_v4 }
 0x264   : > { %v492_v47 = vsel %vm311_vm0, %v490_v46, -inf }
 0x265   : > { %493 = vmax.xlane.f32.xlu1 %v492_v47  ;;  %v434_v13 = vor.u32 1.1754944e-38, %v433_v9  ;;  %vm432_vm12 = vcmp.eq.f32.partialorder %v431_v11, 8.507059e+37 }
 0x26d   : > { %577 = vadd.xlane.f32.xlu1 %v576_v49 }
 0x286   : > { %516 = vrot.lane.b32.xlu1 %v1255_v19, %s1049_s25 }
 0x2d8   : > { %v494_v51 = vpop.xlane.xlu1 %493 }
 0x2d9   : > { %v495_v52 = vsub.f32 %v490_v46, %v494_v51 }
 0x2db   : > { %v496_v53 = vmul.f32 1.442695, %v495_v52 }
 0x2dd   : > { %878 = vpow2.f32 %v496_v53 }
 0x2e0   : > { %v578_v54 = vpop.xlane.xlu1 %577 }
 0x2e1   : > { %880 = vrcp.f32 %v578_v54  ;;  %v590_v60 = vand.u32 2147483648, %v578_v54  ;;  %v588_v62 = vand.u32 2147483647, %v578_v54  ;;  %vm584_vm6 = vweird.f32 %v578_v54 }
 0x2e2   : > { %882 = vrcp.f32 %v421_v4 }
 0x2e3   : > { %v879_v55 = vpop.eup %878  ;;  %v591_v0 = vor.u32 1.1754944e-38, %v590_v60  ;;  %vm589_vm8 = vcmp.eq.f32.partialorder %v588_v62, 8.507059e+37 }
 0x2e4   : > { %v498_v56 = vsel %vm311_vm0, %v879_v55, 0.0 }
 0x2e5   : > { %499 = vadd.xlane.f32.xlu2 %v498_v56 }
 0x2e7   : > { %v881_v57 = vpop.eup %880 }
 0x2e8   : > { %v580_v58 = vmul.f32 %v881_v57, %v578_v54  ;;  %vm585_vm5 = vweird.f32 %v881_v57  ;;  %v883_v5 = vpop.eup %882 }
 0x2e9   : > { %vm586_vm7 = vmor %vm584_vm6, %vm585_vm5  ;;  %v423_v6 = vmul.f32 %v883_v5, %v421_v4  ;;  %vm428_vm10 = vweird.f32 %v883_v5 }
 0x2ea   : > { %v581_v59 = vsub.f32 1.0, %v580_v58  ;;  %vm429_vm11 = vmor %vm427_vm9, %vm428_vm10 }
 0x2eb   : > { %v424_v7 = vsub.f32 1.0, %v423_v6 }
 0x2ec   : > { %v582_v61 = vmul.f32 %v881_v57, %v581_v59 }
 0x2ed   : > { %v425_v8 = vmul.f32 %v883_v5, %v424_v7 }
 0x2ee   : > { %v583_v63 = vadd.f32 %v881_v57, %v582_v61 }
 0x2ef   : > { %v426_v10 = vadd.f32 %v883_v5, %v425_v8 }
 0x2f0   : > { %v587_v1 = vsel %vm586_vm7, %v881_v57, %v583_v63 }
 0x2f1   : > { %v592_v2 = vsel %vm589_vm8, %v591_v0, %v587_v1  ;;  %v430_v14 = vsel %vm429_vm11, %v883_v5, %v426_v10 }
 0x2f2   : > { %v593_v3 = vmul.f32 %v877_v48, %v592_v2  ;;  %v435_v15 = vsel %vm432_vm12, %v434_v13, %v430_v14 }
 0x2f4   : > { %802 = vmatmul.msk.f32.vlgmr.msrb.gmra.mxu2 %vm311_vm0, %v593_v3 }
 0x2f8   : > { %v517_v20 = vpop.permute.xlu1 %516 }
 0x2fd   : > { %438 = vrot.lane.b32.xlu2 %v1255_v19, %s1048_s6  ;;  %v436_v19 = vmul.f32 %v1261_v29, %v435_v15 }
 0x358   : > { %v500_v12 = vpop.xlane.xlu2 %499 }
 0x359   : > { %884 = vrcp.f32 %v500_v12  ;;  %v512_v22 = vand.u32 2147483648, %v500_v12  ;;  %v510_v24 = vand.u32 2147483647, %v500_v12  ;;  %vm506_vm14 = vweird.f32 %v500_v12 }
 0x35b   : > { %v513_v26 = vor.u32 1.1754944e-38, %v512_v22  ;;  %vm511_vm1 = vcmp.eq.f32.partialorder %v510_v24, 8.507059e+37 }
 0x35f   : > { %v885_v16 = vpop.eup %884 }
 0x360   : > { %v502_v17 = vmul.f32 %v885_v16, %v500_v12  ;;  %v439_v18 = vpop.permute.xlu2 %438  ;;  %vm507_vm13 = vweird.f32 %v885_v16 }
 0x361   : > { %459 = vmatpush.msra.mxu3 %v439_v18  ;;  %vm508_vm15 = vmor %vm506_vm14, %vm507_vm13 }
 0x362   : > { %v503_v21 = vsub.f32 1.0, %v502_v17  ;;  %796 = vmatmul.msk.f32.vlgmr.msra.gmra.mxu3 %vm311_vm0, %v436_v19 }
 0x363   : > { %537 = vmatpush.msrb.mxu3 %v517_v20 }
 0x364   : > { %v504_v23 = vmul.f32 %v885_v16, %v503_v21 }
 0x366   : > { %v505_v25 = vadd.f32 %v885_v16, %v504_v23 }
 0x368   : > { %v509_v27 = vsel %vm508_vm15, %v885_v16, %v505_v25 }
 0x369   : > { %v514_v28 = vsel %vm511_vm1, %v513_v26, %v509_v27 }
 0x36a   : > { %v515_v29 = vmul.f32 %v879_v55, %v514_v28 }
 0x36c   : > { %799 = vmatmul.msk.f32.vlgmr.msrb.gmra.mxu3 %vm311_vm0, %v515_v29 }
 0x377   : > { %v617_v30 = vpop.f32.mrf.mxu2 }
 0x378   : > { %629 = vrot.lane.b32.xlu1 %v617_v30, %s1051_s11 }
 0x3e5   : > { %v461_v31 = vpop.f32.mrf.mxu3 }
 0x3e6   : > { %621 = vrot.lane.b32.xlu2 %v461_v31, %s1052_s10 }
 0x3ea   : > { %v630_v36 = vpop.permute.xlu1 %629 }
 0x3ef   : > { %v539_v32 = vpop.f32.mrf.mxu3 }
 0x3f0   : > { %625 = vrot.lane.b32.xlu0 %v539_v32, %s1053_s20 }
 0x440   : > { %v622_v33 = vpop.permute.xlu2 %621 }
 0x441   : > { %v632_v34 = vsel %vm311_vm0, %v1269_v42, %v622_v33 }
 0x462   : > { %v626_v35 = vpop.permute.xlu0 %625 }
 0x463   : > { %v634_v37 = vsel %vm633_vm2, %v632_v34, %v626_v35 }
 0x464   : > { %v636_v38 = vsel %vm635_vm3, %v634_v37, %v630_v36 }
 0x465   : > { %638 = vst.msk [vmem:[%s300_s17] sm:$0xff] %vm637_vm4, %v636_v38 }
 0x466   : > { %1003 = shalt.err (!%p1000_p0)
}
 0x467   : > { %813 = dma.vmem_to_hbm [thread:$0]  (%p1125_p11), %s653_s5, 128, %s655_s13, %s640_s19  }
 0x468 PF: > { %s666_s24 = sand.u32 1, %s1034_s15   ;;  %p826_p8 = pnand %p779_p9, %p1129_p12 }
 0x469   : > { %s667_s1 = scalar_lea.sflag [#allocation4], %s666_s24 }
 0x46a   : > { %p827_p10 = pneg %p826_p8 }
 0x46c   : > { %1029 = dma.done.wait (%p827_p10), %s667_s1, 128  }
 0x46d   : > { %1031 = vsyncadd (%p827_p10), %s667_s1, 4294967168  ;;  %s1334_s9 = sld [smem:[#allocation12_spill]]  ;;  %p20_p1 = scmp.ge.s32.totalorder %s1104_s21, 4  }
 0x46e   : > { %s1335_s17 = sld [smem:[#allocation13_spill]]  ;;  %s1336_s15 = smov %s1038_s16 }
 0x46f   : > { %s1338_s18 = smov %s1104_s21  ;;  %22 = sbr.rel (!%p20_p1) target bundleno = 9 (0x9), region = 108 }
 0x473   : > { %s1337_s16 = smov %s1334_s9 }
 0x474   :  { %673 = vsyncpa [#allocation3], 1 }
 0x475   :  { %675 = vsyncpa [#allocation3 + $0x1], 1 }
 0x476   :  { %676 = vsyncpa [#allocation6], 1 }
 0x477   :  { %678 = vsyncpa [#allocation6 + $0x1], 1 }
 0x478   :  { %679 = vsyncpa [#allocation4], 1 }
 0x479   :  { %681 = vsyncpa [#allocation4 + $0x1], 1 }

</bundles_post_ra>
